<compile_context>
chip_gen: v7x
topology: tpu7x:2x2x1
jax: 0.10.0
libtpu: 0.0.40
codegen_flags: <defaults>
</compile_context>

<pallas_src>
import functools

import numpy as np

import jax
import jax.numpy as jnp
from jax.experimental import pallas as pl
from jax.experimental.pallas import tpu as pltpu


def _moving_avg_matmul_kernel(x_ref, a_ref, o_ref):
    # x_ref: (rows_tile, L)        flattened (batch*channel) rows, L on lanes
    # a_ref: (L, out_tile)         folded replicate-pad + AvgPool1d weights
    # o_ref: (rows_tile, out_tile) lane-dense output block
    o_ref[...] = jnp.dot(
        x_ref[...], a_ref[...], preferred_element_type=jnp.float32
    ).astype(o_ref.dtype)


@functools.lru_cache(maxsize=None)
def _avg_matrix_host(seq_len, kernel_size, stride):
    """(L, L_out) float64 numpy matrix folding replicate padding + pooling."""
    pad = (kernel_size - 1) // 2
    l_pad = seq_len + 2 * pad
    l_out = (l_pad - kernel_size) // stride + 1
    pos = np.arange(l_pad)
    src = np.clip(pos - pad, 0, seq_len - 1)                       # replicate pad
    starts = np.arange(l_out)[:, None] * stride
    window = (pos[None, :] >= starts) & (pos[None, :] < starts + kernel_size)
    scatter = (src[:, None] == np.arange(seq_len)[None, :])        # (l_pad, L)
    a = window.astype(np.float64) @ scatter.astype(np.float64) / kernel_size
    return np.ascontiguousarray(a.T)                               # (L, l_out)


@functools.lru_cache(maxsize=None)
def _avg_matrix(seq_len, kernel_size, stride, dtype_name):
    """Device-resident, dtype-matched, cached per (L, K, stride, dtype)."""
    return jnp.asarray(_avg_matrix_host(seq_len, kernel_size, stride),
                       dtype=dtype_name)


def _round_down(n, m):
    return max(m, (n // m) * m)


def moving_avg(x, kernel_size, stride, *, rows_tile=None, out_tile=None):
    """x: (B, L, C) -> (B, L_out, C), matching the PyTorch moving_avg module."""
    B, L, C = x.shape
    if x.dtype not in (jnp.dtype(jnp.float32), jnp.dtype(jnp.bfloat16)):
        x = x.astype(jnp.float32)
    itemsize = x.dtype.itemsize

    a = _avg_matrix(L, kernel_size, stride, jnp.dtype(x.dtype).name)  # (L, L_out)
    l_out = a.shape[1]

    # Layout plumbing in the wrapper: present a lane-dense 2-D slab to Pallas.
    M = B * C
    x2 = jnp.transpose(x, (0, 2, 1)).reshape(M, L)                    # (B*C, L)

    # Row tile (M axis): ~4 MiB x blocks, multiple of 8 (or full M).
    if rows_tile is None:
        cap = _round_down((4 * 1024 * 1024) // max(1, L * itemsize), 8)
        rows_tile = M if M <= cap else cap
    # Output-column tile (N axis): multiple of 128 (or full l_out),
    # keeping the A block at ~<=2 MiB and well inside v7x's VMEM budget.
    if out_tile is None:
        cap = min(512, _round_down((2 * 1024 * 1024) // max(1, L * itemsize), 128))
        out_tile = l_out if l_out <= cap else cap

    grid = (pl.cdiv(M, rows_tile), pl.cdiv(l_out, out_tile))

    cost = pl.CostEstimate(
        flops=2 * M * L * l_out,
        transcendentals=0,
        bytes_accessed=(M * L + L * l_out + M * l_out) * itemsize,
    )

    out2 = pl.pallas_call(
        _moving_avg_matmul_kernel,
        out_shape=jax.ShapeDtypeStruct((M, l_out), x.dtype),
        grid_spec=pltpu.PrefetchScalarGridSpec(
            num_scalar_prefetch=0,
            grid=grid,
            in_specs=[
                # x rows: depend only on i; j is the fastest grid axis so the
                # x block is NOT re-DMA'd while sweeping output-column tiles.
                pl.BlockSpec((rows_tile, L), lambda i, j: (i, 0)),
                # Weights: tiled over output columns only.
                pl.BlockSpec((L, out_tile), lambda i, j: (0, j)),
            ],
            out_specs=pl.BlockSpec((rows_tile, out_tile), lambda i, j: (i, j)),
        ),
        compiler_params=pltpu.CompilerParams(
            dimension_semantics=("parallel", "parallel"),
            vmem_limit_bytes=32 * 1024 * 1024,
        ),
        cost_estimate=cost,
    )(x2, a)

    # (B*C, L_out) -> (B, L_out, C): thin wrapper transpose (lane-dense stores
    # inside the kernel were the priority; fuse this into series_decomp's
    # subtraction downstream if desired).
    return jnp.transpose(out2.reshape(B, C, l_out), (0, 2, 1))


def _reference(x, kernel_size, stride):
    # Pure-JAX reference reproducing the PyTorch module (pad + window mean).
    pad = (kernel_size - 1) // 2
    front = jnp.repeat(x[:, 0:1, :], pad, axis=1)
    end = jnp.repeat(x[:, -1:, :], pad, axis=1)
    xp = jnp.concatenate([front, x, end], axis=1)
    l_pad = xp.shape[1]
    l_out = (l_pad - kernel_size) // stride + 1
    outs = [jnp.mean(xp[:, i * stride: i * stride + kernel_size, :], axis=1)
            for i in range(l_out)]
    return jnp.stack(outs, axis=1)


if __name__ == "__main__":
    # Config matching the Model's series_decomp: kernel_size=25, stride=1.
    kernel_size, stride = 25, 1
    B, L, C = 8, 96, 7

    key = jax.random.PRNGKey(0)
    x = jax.random.normal(key, (B, L, C), dtype=jnp.float32)
    ref = _reference(x, kernel_size, stride)

    # Default tiling.
    out = jax.block_until_ready(moving_avg(x, kernel_size, stride))
    assert out.shape == ref.shape, (out.shape, ref.shape)
    # Tolerance covers default (single-pass) MXU precision (~1e-3), as allowed
    # by the review; HIGHEST was dropped intentionally.
    assert jnp.allclose(out, ref, atol=1e-2, rtol=1e-2), "mismatch vs reference"

    # Forced ragged row tiling: M=56 tiled by 32 -> grid (2, 1) with a masked
    # edge block (exercises the ceil-div / clamped-writeback path).
    out_t = jax.block_until_ready(moving_avg(x, kernel_size, stride, rows_tile=32))
    assert jnp.allclose(out_t, ref, atol=1e-2, rtol=1e-2), "mismatch (ragged rows)"

    # stride > 1, awkward (non-multiple-of-8) shapes, ragged row blocks.
    x2 = jax.random.normal(jax.random.PRNGKey(1), (2, 17, 5), dtype=jnp.float32)
    out2 = jax.block_until_ready(moving_avg(x2, 4, 3, rows_tile=8))
    ref2 = _reference(x2, 4, 3)
    assert out2.shape == ref2.shape, (out2.shape, ref2.shape)
    assert jnp.allclose(out2, ref2, atol=1e-2, rtol=1e-2), "mismatch (stride>1)"

    print("KERNEL_OK")
</pallas_src>

<mosaic_0001>
module attributes {stable_mosaic.version = 11 : i64} {
  func.func @_moving_avg_matmul_kernel(%arg0: i32, %arg1: i32, %arg2: memref<56x96xf32, #tpu.memory_space<vmem>>, %arg3: memref<96x96xf32, #tpu.memory_space<vmem>>, %arg4: memref<56x96xf32, #tpu.memory_space<vmem>>) attributes {dimension_semantics = [#tpu.dimension_semantics<parallel>, #tpu.dimension_semantics<parallel>], iteration_bounds = array<i64: 1, 1>, scalar_prefetch = 0 : i64, scratch_operands = 0 : i64, tpu.core_type = #tpu.core_type<tc>, window_params = [{transform_indices = @transform_0, window_bounds = array<i64: 56, 96>}, {transform_indices = @transform_1, window_bounds = array<i64: 96, 96>}, {transform_indices = @transform_2, window_bounds = array<i64: 56, 96>}]} {
    %c0 = arith.constant 0 : index
    %c0_0 = arith.constant 0 : index
    %0 = vector.load %arg2[%c0, %c0_0] : memref<56x96xf32, #tpu.memory_space<vmem>>, vector<56x96xf32>
    %c0_1 = arith.constant 0 : index
    %c0_2 = arith.constant 0 : index
    %1 = vector.load %arg3[%c0_1, %c0_2] : memref<96x96xf32, #tpu.memory_space<vmem>>, vector<96x96xf32>
    %cst = arith.constant dense<0.000000e+00> : vector<56x96xf32>
    %2 = tpu.matmul %0, %1, %cst {dimension_numbers = #tpu.dot_dimension_numbers<[1], [0], [0], [1], [0, 0, 1, 1], [], []>} : vector<56x96xf32>, vector<96x96xf32>, vector<56x96xf32> -> vector<56x96xf32>
    %c0_3 = arith.constant 0 : index
    %c0_4 = arith.constant 0 : index
    %3 = vector.load %arg4[%c0_3, %c0_4] : memref<56x96xf32, #tpu.memory_space<vmem>>, vector<56x96xf32>
    tpu.vector_store %arg4[%c0_3, %c0_4], %2 {strides = array<i32>} : memref<56x96xf32, #tpu.memory_space<vmem>>, vector<56x96xf32>,
    return
  }
  func.func @transform_0(%arg0: i32, %arg1: i32) -> (i32, i32) {
    %c0_i32 = arith.constant 0 : i32
    %c0_i32_0 = arith.constant 0 : i32
    return %arg0, %c0_i32 : i32, i32
  }
  func.func @transform_1(%arg0: i32, %arg1: i32) -> (i32, i32) {
    %c0_i32 = arith.constant 0 : i32
    %c0_i32_0 = arith.constant 0 : i32
    return %c0_i32, %arg1 : i32, i32
  }
  func.func @transform_2(%arg0: i32, %arg1: i32) -> (i32, i32) {
    %c0_i32 = arith.constant 0 : i32
    return %arg0, %arg1 : i32, i32
  }
}

</mosaic_0001>

<bundles_post_ra>
// kernel: tpu_custom_call.1
= control target key start
LH: loop header
LB: loop body
LE: loop exit
PB: predicated region body
PF: predicated region fallthrough
CT: control target
= control target key end

     0   :  { %7 = vsyncpa [#allocation3], 0  ;;  %s476_s0 = inlined_call_operand.hbm [shape: f32[56,96], index: 0, kind: input, shape index: {}]   ;;  %s477_s1 = inlined_call_operand.hbm [shape: f32[96,96], index: 1, kind: input, shape index: {}]   ;;  %s478_s2 = inlined_call_operand.hbm [shape: f32[56,96], index: 2, kind: output, shape index: {}]  }
   0x1   :  { %8 = vsyncpa [#allocation6], 0 }
   0x2   :  { %9 = vsyncpa [#allocation4], 0  ;;  %s387_s9 = smov [#allocation2]   ;;  %s315_s13 = scalar_lea.hbm %s476_s0, 896 }
   0x3   :  { %s15_s10 = sshll.u32 %s387_s9, 4  ;;  %p316_p0 = scmp.ne.s32.totalorder %s476_s0, %s315_s13  ;;  %s16_s10 = int_to_ptr.vmem [resolvable:$true] %s15_s10 }
   0x4   :  { %p319_p1 = scmp.lt.u32.totalorder %s315_s13, %s476_s0 }
   0x6   :  { %p321_p2 = pnand %p319_p1, %p316_p0 }
   0x8   :  { %324 = shalt.err (!%p321_p2)
}
   0x9   :  { %s325_s18 = scalar_lea.vmem %s16_s10, 896  ;;  %p330_p4 = scmp.lt.s32.totalorder %s16_s10, %s16_s10 }
   0xa   :  { %p326_p3 = scmp.ne.s32.totalorder %s16_s10, %s325_s18  ;;  %p331_p5 = scmp.lt.s32.totalorder %s325_s18, %s325_s18 }
   0xc   :  { %p332_p6 = por %p331_p5, %p330_p4 }
   0xe   :  { %p333_p7 = pnand %p332_p6, %p326_p3 }
  0x10   :  { %336 = shalt.err (!%p333_p7)
}
  0x11   :  { %s388_s19 = smov 128   ;;  %s389_s20 = smov 8  }
  0x12   :  { %21 = dma.hbm_to_vmem [thread:$0]  %s476_s0, 896, %s16_s10, [#allocation3], %s388_s19, %s388_s19, %s389_s20  }
  0x13   :  { %s390_s23 = smov [#allocation5]   ;;  %s337_s27 = scalar_lea.hbm %s477_s1, 1536 }
  0x14   :  { %s27_s24 = sshll.u32 %s390_s23, 4  ;;  %p338_p8 = scmp.ne.s32.totalorder %s477_s1, %s337_s27  ;;  %s28_s24 = int_to_ptr.vmem [resolvable:$true] %s27_s24 }
  0x15   :  { %p341_p9 = scmp.lt.u32.totalorder %s337_s27, %s477_s1 }
  0x17   :  { %p343_p10 = pnand %p341_p9, %p338_p8 }
  0x19   :  { %346 = shalt.err (!%p343_p10)
}
  0x1a   :  { %s347_s4 = scalar_lea.vmem %s28_s24, 1536  ;;  %p352_p12 = scmp.lt.s32.totalorder %s28_s24, %s28_s24 }
  0x1b   :  { %p348_p11 = scmp.ne.s32.totalorder %s28_s24, %s347_s4  ;;  %p353_p13 = scmp.lt.s32.totalorder %s347_s4, %s347_s4 }
  0x1d   :  { %p354_p0 = por %p353_p13, %p352_p12 }
  0x1f   :  { %p355_p1 = pnand %p354_p0, %p348_p11 }
  0x21   :  { %358 = shalt.err (!%p355_p1)
}
  0x22   :  { %33 = dma.hbm_to_vmem [thread:$0]  %s477_s1, 1536, %s28_s24, [#allocation6], %s388_s19, %s388_s19, %s389_s20  }
  0x23   :  { %381 = dma.done.wait [#allocation3], 896  }
  0x24   :  { %382 = vsyncadd [#allocation3], 4294966400 }
  0x25   :  { %383 = dma.done.wait [#allocation6], 1536  }
  0x26   :  { %384 = vsyncadd [#allocation6], 4294965760  ;;  %v391_v0 = vmov 0.0|0.0   ;;  %vm392_vm0 = vmmov 0   ;;  %v393_v1 = vmov 0.0   ;;  %v47_v2 = vld [vmem:[#allocation5] sm:$0xff] }
  0x27   :  { %277 = vmatprep.subr.bf16.mxu0 %v391_v0  ;;  %295 = vmatprep.subr.bf16.mxu1 %v391_v0  ;;  %v48_v3 = vld [vmem:[#allocation5 + $0x8] sm:$0xff]  ;;  %v49_v4 = vld [vmem:[#allocation5 + $0x10] sm:$0xff]  ;;  %v50_v6 = vld [vmem:[#allocation5 + $0x18] sm:$0xff]  ;;  %vm59_vm1 = vcmask 785408   ;;  %s394_s1 = smov [#allocation7]  }
  0x28   :  { %256 = vmatprep.mubr.msk.f32.mxu0 %vm392_vm0, %v393_v1  ;;  %268 = vmatprep.mubr.msk.f32.mxu1 %vm392_vm0, %v393_v1  ;;  %v278_v5 = vpack.c.bf16 %v48_v3, %v47_v2  ;;  %v281_v7 = vpack.c.bf16 %v50_v6, %v49_v4  ;;  %v51_v8 = vld [vmem:[#allocation5 + $0x20] sm:$0xff]  ;;  %v52_v9 = vld [vmem:[#allocation5 + $0x28] sm:$0xff]  ;;  %v53_v11 = vld [vmem:[#allocation5 + $0x30] sm:$0xff]  ;;  %s193_s6 = sshll.u32 %s394_s1, 4  ;;  %s194_s6 = int_to_ptr.vmem [resolvable:$true] %s193_s6 }
  0x29   :  { %v284_v10 = vpack.c.bf16 %v52_v9, %v51_v8  ;;  %v54_v12 = vld [vmem:[#allocation5 + $0x38] sm:$0xff]  ;;  %v55_v14 = vld [vmem:[#allocation5 + $0x40] sm:$0xff]  ;;  %v56_v15 = vld [vmem:[#allocation5 + $0x48] sm:$0xff]  ;;  %s359_s7 = scalar_lea.vmem %s194_s6, 896  ;;  %p364_p3 = scmp.lt.s32.totalorder %s194_s6, %s194_s6 }
  0x2a   :  { %279 = vmatpush3.bf16.msra.mxu0 %v278_v5  ;;  %301 = vmatpush3.bf16.msra.mxu1 %v278_v5  ;;  %v287_v13 = vpack.c.bf16 %v54_v12, %v53_v11  ;;  %v290_v16 = vpack.c.bf16 %v56_v15, %v55_v14  ;;  %v57_v17 = vld [vmem:[#allocation5 + $0x50] sm:$0xff]  ;;  %v58_v18 = vld [vmem:[#allocation5 + $0x58] sm:$0xff]  ;;  %v40_v20 = vld [vmem:[#allocation2] sm:$0xff]  ;;  %p360_p2 = scmp.ne.s32.totalorder %s194_s6, %s359_s7  ;;  %p365_p4 = scmp.lt.s32.totalorder %s359_s7, %s359_s7 }
  0x2b   :  { %280 = vmatprep.subr.bf16.mxu0 %v391_v0  ;;  %296 = vmatprep.subr.bf16.mxu1 %v391_v0  ;;  %v293_v19 = vpack.c.bf16 %v58_v18, %v57_v17  ;;  %v44_v21 = vld [vmem:[#allocation2 + $0x20] sm:$0xff]  ;;  %v41_v22 = vld [vmem:[#allocation2 + $0x8] sm:$0xff]  ;;  %v42_v24 = vld [vmem:[#allocation2 + $0x10] sm:$0xff] }
  0x2c   :  { %v45_v23 = vld [vmem:[#allocation2 + $0x28] sm:$0xff]  ;;  %v46_v25 = vld [vmem:[#allocation2 + $0x30] sm:$0xff]  ;;  %v43_v26 = vld [vmem:[#allocation2 + $0x18] sm:$0xff]  ;;  %p366_p5 = por %p365_p4, %p364_p3 }
  0x2e   :  { %282 = vmatpush3.bf16.msra.mxu0 %v281_v7  ;;  %302 = vmatpush3.bf16.msra.mxu1 %v281_v7  ;;  %p367_p6 = pnand %p366_p5, %p360_p2 }
  0x2f   :  { %283 = vmatprep.subr.bf16.mxu0 %v391_v0  ;;  %297 = vmatprep.subr.bf16.mxu1 %v391_v0 }
  0x32   :  { %285 = vmatpush3.bf16.msra.mxu0 %v284_v10  ;;  %303 = vmatpush3.bf16.msra.mxu1 %v284_v10 }
  0x33   :  { %286 = vmatprep.subr.bf16.mxu0 %v391_v0  ;;  %298 = vmatprep.subr.bf16.mxu1 %v391_v0 }
  0x36   :  { %288 = vmatpush3.bf16.msra.mxu0 %v287_v13  ;;  %304 = vmatpush3.bf16.msra.mxu1 %v287_v13 }
  0x37   :  { %289 = vmatprep.subr.bf16.mxu0 %v391_v0  ;;  %299 = vmatprep.subr.bf16.mxu1 %v391_v0 }
  0x3a   :  { %291 = vmatpush3.bf16.msra.mxu0 %v290_v16  ;;  %305 = vmatpush3.bf16.msra.mxu1 %v290_v16 }
  0x3b   :  { %292 = vmatprep.subr.bf16.mxu0 %v391_v0  ;;  %300 = vmatprep.subr.bf16.mxu1 %v391_v0 }
  0x3e   :  { %294 = vmatpush3.bf16.msra.mxu0 %v293_v19  ;;  %306 = vmatpush3.bf16.msra.mxu1 %v293_v19 }
  0x41   :  { %257 = vmatmul.mubr.msk.f32.vlgmr.msra.gmra.mrb[0].mxu0 %vm59_vm1, %v40_v20  ;;  %269 = vmatmul.mubr.msk.f32.vlgmr.msra.gmra.mrb[0].mxu1 %vm59_vm1, %v44_v21 }
  0x42   :  { %259 = vmatprep.mubr.msk.f32.mxu0 %vm392_vm0, %v393_v1  ;;  %271 = vmatprep.mubr.msk.f32.mxu1 %vm392_vm0, %v393_v1 }
  0x45   :  { %260 = vmatmul.mubr.msk.f32.gmra.mrb[2].mxu0 %vm59_vm1, %v41_v22  ;;  %272 = vmatmul.mubr.msk.f32.gmra.mrb[2].mxu1 %vm59_vm1, %v45_v23 }
  0x46   :  { %262 = vmatprep.mubr.msk.f32.mxu0 %vm392_vm0, %v393_v1  ;;  %274 = vmatprep.mubr.msk.f32.mxu1 %vm392_vm0, %v393_v1 }
  0x49   :  { %263 = vmatmul.mubr.msk.f32.gmra.mrb[4].mxu0 %vm59_vm1, %v42_v24  ;;  %275 = vmatmul.mubr.msk.f32.gmra.mrb[4].mxu1 %vm59_vm1, %v46_v25 }
  0x4a   :  { %265 = vmatprep.mubr.msk.f32.mxu0 %vm392_vm0, %v393_v1 }
  0x4d   :  { %266 = vmatmul.mubr.msk.f32.gmra.mrb[6].mxu0 %vm59_vm1, %v43_v26 }
 0x114   :  { %v147_v27 = vpop.f32.mrb[0].mxu0  ;;  %v167_v28 = vpop.f32.mrb[0].mxu1 }
 0x115   :  { %181 = vst.msk [vmem:[#allocation7] sm:$0xff] %vm59_vm1, %v147_v27  ;;  %v258_v29 = vpop.f32.mrb[1].mxu0  ;;  %185 = vst.msk [vmem:[#allocation7 + $0x20] sm:$0xff] %vm59_vm1, %v167_v28  ;;  %v270_v30 = vpop.f32.mrb[1].mxu1 }
 0x118   :  { %v152_v31 = vpop.f32.mrb[2].mxu0  ;;  %v172_v32 = vpop.f32.mrb[2].mxu1 }
 0x119   :  { %182 = vst.msk [vmem:[#allocation7 + $0x8] sm:$0xff] %vm59_vm1, %v152_v31  ;;  %v261_v33 = vpop.f32.mrb[3].mxu0  ;;  %186 = vst.msk [vmem:[#allocation7 + $0x28] sm:$0xff] %vm59_vm1, %v172_v32  ;;  %v273_v34 = vpop.f32.mrb[3].mxu1 }
 0x11c   :  { %v157_v35 = vpop.f32.mrb[4].mxu0  ;;  %v177_v36 = vpop.f32.mrb[4].mxu1 }
 0x11d   :  { %183 = vst.msk [vmem:[#allocation7 + $0x10] sm:$0xff] %vm59_vm1, %v157_v35  ;;  %v264_v37 = vpop.f32.mrb[5].mxu0  ;;  %187 = vst.msk [vmem:[#allocation7 + $0x30] sm:$0xff] %vm59_vm1, %v177_v36  ;;  %v276_v38 = vpop.f32.mrb[5].mxu1 }
 0x120   :  { %v162_v39 = vpop.f32.mrb[6].mxu0 }
 0x121   :  { %184 = vst.msk [vmem:[#allocation7 + $0x18] sm:$0xff] %vm59_vm1, %v162_v39  ;;  %v267_v40 = vpop.f32.mrb[7].mxu0 }
 0x122   :  { %370 = shalt.err (!%p367_p6)
}
 0x123   :  { %s371_s10 = scalar_lea.hbm %s478_s2, 896 }
 0x124   :  { %p372_p7 = scmp.ne.s32.totalorder %s478_s2, %s371_s10  ;;  %p375_p8 = scmp.lt.u32.totalorder %s371_s10, %s478_s2 }
 0x126   :  { %p377_p9 = pnand %p375_p8, %p372_p7 }
 0x128   :  { %380 = shalt.err (!%p377_p9)
}
 0x129   :  { %199 = dma.vmem_to_hbm [thread:$0]  %s194_s6, 896, %s478_s2, [#allocation4], %s388_s19, %s388_s19, %s389_s20  }
 0x12a   :  { %385 = dma.done.wait [#allocation4], 896  }
 0x12b   :  { %386 = vsyncadd [#allocation4], 4294966400 }
 0x12c   :  { %203 = vsyncpa [#allocation3], 1 }
 0x12d   :  { %204 = vsyncpa [#allocation6], 1 }
 0x12e   :  { %205 = vsyncpa [#allocation4], 1 }

</bundles_post_ra>
